<compile_context>
chip_gen: v6e
topology: v6e:2x2x1
jax: 0.10.0
libtpu: 0.0.40
codegen_flags: <defaults>
</compile_context>

<pallas_src>
import functools

import jax
import jax.numpy as jnp
from jax.experimental import pallas as pl
from jax.experimental.pallas import tpu as pltpu


def _se_batch_small_kernel(est_ref, gt_ref, out_ref):
    # est_ref/gt_ref: (B, R, 128); out_ref: (B, 128)
    diff = est_ref[...].astype(jnp.float32) - gt_ref[...].astype(jnp.float32)
    s = jnp.sum(diff, axis=1)                  # (B, 128)  sublane collapse
    s = jnp.sum(s, axis=1, keepdims=True)      # (B, 1)    lane collapse
    out_ref[...] = jnp.broadcast_to(s * s, out_ref.shape)


def _se_batch_tiled_kernel(est_ref, gt_ref, out_ref, acc_ref, *, tile_r, r_total):
    # est_ref/gt_ref: (1, tile_r, 128); out_ref: (1, 1, 128); acc_ref: (8, 128)
    k = pl.program_id(1)

    @pl.when(k == 0)
    def _():
        acc_ref[...] = jnp.zeros_like(acc_ref)

    diff = est_ref[0].astype(jnp.float32) - gt_ref[0].astype(jnp.float32)  # (tile_r, 128)

    # Mask the ragged tail along R (only traced when a tail exists).
    if r_total % tile_r != 0:
        valid = r_total - k * tile_r
        row = jax.lax.broadcasted_iota(jnp.int32, (tile_r, 128), 0)
        diff = jnp.where(row < valid, diff, 0.0)

    # Pure vreg-wise VPU adds into a lane/sublane-dense accumulator.
    acc_ref[...] += jnp.sum(diff.reshape(tile_r // 8, 8, 128), axis=0)

    @pl.when(k == pl.num_programs(1) - 1)
    def _():
        t = jnp.sum(acc_ref[...], axis=0, keepdims=True)   # (1, 128)
        t = jnp.sum(t, axis=1, keepdims=True)               # (1, 1)
        out_ref[...] = jnp.broadcast_to((t * t)[None], out_ref.shape)


def se_batch(estimated_density_map, gt_map, *, tile_r=4096,
             small_bytes=8 * 1024 * 1024):
    """Pallas equivalent of SEBatch.forward. Returns shape (B,) float32."""
    assert estimated_density_map.shape == gt_map.shape
    B = estimated_density_map.shape[0]
    est = estimated_density_map.reshape(B, -1)
    gt = gt_map.reshape(B, -1)
    N = est.shape[1]

    # Lane-align the flat reduction axis; free reshape when N % 128 == 0.
    pad = (-N) % 128
    if pad:
        # TODO(synk): this pad copies the inputs; only hit when C*H*W % 128 != 0.
        est = jnp.pad(est, ((0, 0), (0, pad)))
        gt = jnp.pad(gt, ((0, 0), (0, pad)))
    R = (N + pad) // 128
    est = est.reshape(B, R, 128)
    gt = gt.reshape(B, R, 128)

    itemsize = jnp.dtype(est.dtype).itemsize
    total_bytes = 2 * B * R * 128 * itemsize

    if total_bytes <= small_bytes:
        # Single invocation: whole arrays as one block, no grid/accumulator.
        out = pl.pallas_call(
            _se_batch_small_kernel,
            out_shape=jax.ShapeDtypeStruct((B, 128), jnp.float32),
        )(est, gt)
        return out[:, 0]

    # Tiled streaming path: contiguous ~MiB-scale blocks per batch row.
    r8 = ((R + 7) // 8) * 8
    tile_r = max(8, (min(tile_r, r8) // 8) * 8)   # multiple of 8, capped by R
    kt = pl.cdiv(R, tile_r)

    out = pl.pallas_call(
        functools.partial(_se_batch_tiled_kernel, tile_r=tile_r, r_total=R),
        out_shape=jax.ShapeDtypeStruct((B, 1, 128), jnp.float32),
        grid_spec=pltpu.PrefetchScalarGridSpec(
            num_scalar_prefetch=0,
            grid=(B, kt),
            in_specs=[
                pl.BlockSpec((1, tile_r, 128), lambda b, k: (b, k, 0)),
                pl.BlockSpec((1, tile_r, 128), lambda b, k: (b, k, 0)),
            ],
            out_specs=pl.BlockSpec((1, 1, 128), lambda b, k: (b, 0, 0)),
            scratch_shapes=[pltpu.VMEM((8, 128), jnp.float32)],
        ),
        compiler_params=pltpu.CompilerParams(
            dimension_semantics=("parallel", "arbitrary"),
            vmem_limit_bytes=32 * 1024 * 1024,
        ),
    )(est, gt)
    return out[:, 0, 0]


if __name__ == "__main__":
    key = jax.random.PRNGKey(0)
    k1, k2, k3, k4 = jax.random.split(key, 4)

    # Small-input single-invocation path.
    B, C, H, W = 2, 4, 16, 16
    est = jax.random.normal(k1, (B, C, H, W), dtype=jnp.float32)
    gt = jax.random.normal(k2, (B, C, H, W), dtype=jnp.float32)
    out = jax.block_until_ready(se_batch(est, gt))
    ref = jnp.square(jnp.sum(est - gt, axis=(1, 2, 3)))
    assert out.shape == (B,)
    assert jnp.allclose(out, ref, rtol=1e-4, atol=1e-4), (out, ref)

    # Tiled streaming path (forced), exercising multi-step accumulation and the
    # ragged-tail mask (R = 10, tile_r = 8 -> 2 k-steps, tail of 2 rows).
    B2, C2, H2, W2 = 2, 4, 20, 16
    est2 = jax.random.normal(k3, (B2, C2, H2, W2), dtype=jnp.float32)
    gt2 = jax.random.normal(k4, (B2, C2, H2, W2), dtype=jnp.float32)
    out2 = jax.block_until_ready(se_batch(est2, gt2, tile_r=8, small_bytes=0))
    ref2 = jnp.square(jnp.sum(est2 - gt2, axis=(1, 2, 3)))
    assert out2.shape == (B2,)
    assert jnp.allclose(out2, ref2, rtol=1e-4, atol=1e-4), (out2, ref2)

    print("KERNEL_OK")
</pallas_src>

<mosaic_0001>
module attributes {stable_mosaic.version = 11 : i64} {
  func.func @_se_batch_small_kernel(%arg0: memref<2x8x128xf32, #tpu.memory_space<vmem>>, %arg1: memref<2x8x128xf32, #tpu.memory_space<vmem>>, %arg2: memref<2x128xf32, #tpu.memory_space<vmem>>) attributes {dimension_semantics = [], scalar_prefetch = 0 : i64, scratch_operands = 0 : i64, tpu.core_type = #tpu.core_type<tc>} {
    %c0 = arith.constant 0 : index
    %c0_0 = arith.constant 0 : index
    %c0_1 = arith.constant 0 : index
    %0 = vector.load %arg0[%c0, %c0_0, %c0_1] : memref<2x8x128xf32, #tpu.memory_space<vmem>>, vector<2x8x128xf32>
    %c0_2 = arith.constant 0 : index
    %c0_3 = arith.constant 0 : index
    %c0_4 = arith.constant 0 : index
    %1 = vector.load %arg1[%c0_2, %c0_3, %c0_4] : memref<2x8x128xf32, #tpu.memory_space<vmem>>, vector<2x8x128xf32>
    %2 = arith.subf %0, %1 : vector<2x8x128xf32>
    %cst = arith.constant dense<0.000000e+00> : vector<2x128xf32>
    %3 = vector.multi_reduction <add>, %2, %cst [1] : vector<2x8x128xf32> to vector<2x128xf32>
    %cst_5 = arith.constant dense<0.000000e+00> : vector<2xf32>
    %4 = vector.multi_reduction <add>, %3, %cst_5 [1] : vector<2x128xf32> to vector<2xf32>
    %5 = vector.shape_cast %4 : vector<2xf32> to vector<2x1xf32>
    %6 = arith.mulf %5, %5 : vector<2x1xf32>
    %7 = vector.shape_cast %6 : vector<2x1xf32> to vector<2x1xf32>
    %8 = vector.broadcast %7 : vector<2x1xf32> to vector<2x128xf32>
    %c0_6 = arith.constant 0 : index
    %c0_7 = arith.constant 0 : index
    %9 = vector.load %arg2[%c0_6, %c0_7] : memref<2x128xf32, #tpu.memory_space<vmem>>, vector<2x128xf32>
    tpu.vector_store %arg2[%c0_6, %c0_7], %8 {strides = array<i32>} : memref<2x128xf32, #tpu.memory_space<vmem>>, vector<2x128xf32>,
    return
  }
}

</mosaic_0001>

<bundles_post_ra>
// kernel: tpu_custom_call.1
= control target key start
LH: loop header
LB: loop body
LE: loop exit
PB: predicated region body
PF: predicated region fallthrough
CT: control target
= control target key end

     0   :  { %7 = vsyncpa [#allocation3], 0  ;;  %s185_s0 = inlined_call_operand.hbm [shape: f32[2,8,128], index: 0, kind: input, shape index: {}]   ;;  %s186_s1 = inlined_call_operand.hbm [shape: f32[2,8,128], index: 1, kind: input, shape index: {}]   ;;  %s187_s2 = inlined_call_operand.hbm [shape: f32[2,128], index: 2, kind: output, shape index: {}]  }
   0x1   :  { %8 = vsyncpa [#allocation6], 0 }
   0x2   :  { %9 = vsyncpa [#allocation4], 0  ;;  %s156_s9 = smov [#allocation2]  }
   0x3   :  { %s15_s10 = sshll.u32 %s156_s9, 4  ;;  %s16_s10 = int_to_ptr.vmem [resolvable:$true] %s15_s10 }
   0x4   :  { %s98_s11 = scalar_lea.vmem %s16_s10, 256  ;;  %p103_p1 = scmp.lt.s32.totalorder %s16_s10, %s16_s10 }
   0x5   :  { %p99_p0 = scmp.ne.s32.totalorder %s16_s10, %s98_s11  ;;  %p104_p2 = scmp.lt.s32.totalorder %s98_s11, %s98_s11 }
   0x7   :  { %p105_p3 = por %p104_p2, %p103_p1 }
   0x9   :  { %p106_p4 = pnand %p105_p3, %p99_p0 }
   0xb   :  { %109 = shalt.err (!%p106_p4)
}
   0xc   :  { %s157_s12 = smov 128   ;;  %s158_s13 = smov 8  }
   0xd   :  { %21 = dma.hbm_to_vmem [thread:$0]  %s185_s0, 256, %s16_s10, [#allocation3], %s157_s12, %s157_s12, %s158_s13  }
   0xe   :  { %s159_s16 = smov [#allocation5]  }
   0xf   :  { %s27_s17 = sshll.u32 %s159_s16, 4  ;;  %s28_s17 = int_to_ptr.vmem [resolvable:$true] %s27_s17 }
  0x10   :  { %s118_s18 = scalar_lea.vmem %s28_s17, 256  ;;  %p123_p6 = scmp.lt.s32.totalorder %s28_s17, %s28_s17 }
  0x11   :  { %p119_p5 = scmp.ne.s32.totalorder %s28_s17, %s118_s18  ;;  %p124_p7 = scmp.lt.s32.totalorder %s118_s18, %s118_s18 }
  0x13   :  { %p125_p8 = por %p124_p7, %p123_p6 }
  0x15   :  { %p126_p9 = pnand %p125_p8, %p119_p5 }
  0x17   :  { %129 = shalt.err (!%p126_p9)
}
  0x18   :  { %33 = dma.hbm_to_vmem [thread:$0]  %s186_s1, 256, %s28_s17, [#allocation6], %s157_s12, %s157_s12, %s158_s13  }
  0x19   :  { %150 = dma.done.wait [#allocation3], 256  }
  0x1a   :  { %151 = vsyncadd [#allocation3], 4294967040 }
  0x1b   :  { %152 = dma.done.wait [#allocation6], 256  }
  0x1c   :  { %153 = vsyncadd [#allocation6], 4294967040  ;;  %v40_v0 = vld [vmem:[#allocation2] sm:$0xff]  ;;  %v41_v1 = vld [vmem:[#allocation2 + $0x8] sm:$0xff]  ;;  %vm60_vm0 = vcmask 1041409   ;;  %vm63_vm1 = vcmask 1041408  }
  0x1d   :  { %v42_v2 = vld [vmem:[#allocation5] sm:$0xff]  ;;  %v43_v3 = vld [vmem:[#allocation5 + $0x8] sm:$0xff]  ;;  %s160_s0 = smov [#allocation7]  }
  0x1e   :  { %v44_v4 = vsub.f32 %v40_v0, %v42_v2  ;;  %v45_v5 = vsub.f32 %v41_v1, %v43_v3  ;;  %s75_s1 = sshll.u32 %s160_s0, 4  ;;  %s76_s1 = int_to_ptr.vmem [resolvable:$true] %s75_s1 }
  0x1f   :  { %s130_s21 = scalar_lea.vmem %s76_s1, 32  ;;  %p135_p11 = scmp.lt.s32.totalorder %s76_s1, %s76_s1 }
  0x20   :  { %v46_v6 = vrot.slane %v44_v4, 4  ;;  %v52_v7 = vrot.slane %v45_v5, 4  ;;  %p131_p10 = scmp.ne.s32.totalorder %s76_s1, %s130_s21  ;;  %p136_p12 = scmp.lt.s32.totalorder %s130_s21, %s130_s21 }
  0x22   :  { %v47_v8 = vadd.f32 %v46_v6, %v44_v4  ;;  %v53_v9 = vadd.f32 %v52_v7, %v45_v5  ;;  %p137_p13 = por %p136_p12, %p135_p11 }
  0x24   :  { %v48_v10 = vrot.slane %v47_v8, 2  ;;  %v54_v11 = vrot.slane %v53_v9, 2  ;;  %p138_p0 = pnand %p137_p13, %p131_p10 }
  0x26   :  { %v49_v12 = vadd.f32 %v48_v10, %v47_v8  ;;  %v55_v13 = vadd.f32 %v54_v11, %v53_v9 }
  0x28   :  { %v50_v14 = vrot.slane %v49_v12, 1  ;;  %v56_v15 = vrot.slane %v55_v13, 1 }
  0x2a   :  { %v51_v16 = vadd.f32 %v50_v14, %v49_v12  ;;  %v57_v17 = vadd.f32 %v56_v15, %v55_v13 }
  0x2c   :  { %v61_v18 = vsel %vm60_vm0, %v57_v17, %v51_v16 }
  0x2d   :  { %v64_v19 = vsel %vm63_vm1, %v61_v18, 0.0 }
  0x2e   :  { %65 = vadd.xlane.f32.xlu0 %v64_v19 }
  0xb7   :  { %v66_v20 = vpop.xlane.xlu0 %65 }
  0xb8   :  { %v67_v21 = vmul.f32 %v66_v20, %v66_v20 }
  0xba   :  { %68 = vst [vmem:[#allocation7] sm:$0x3] %v67_v21 }
  0xbb   :  { %141 = shalt.err (!%p138_p0)
}
  0xbc   :  { %78 = dma.vmem_to_hbm [thread:$0]  %s76_s1, 32, %s187_s2, [#allocation4]  }
  0xbd   :  { %154 = dma.done.wait [#allocation4], 32  }
  0xbe   :  { %155 = vsyncadd [#allocation4], 4294967264 }
  0xbf   :  { %82 = vsyncpa [#allocation3], 1 }
  0xc0   :  { %83 = vsyncpa [#allocation6], 1 }
  0xc1   :  { %84 = vsyncpa [#allocation4], 1 }

</bundles_post_ra>
